<compile_context>
chip_gen: v6e
topology: v6e:2x2x1
jax: 0.10.0
libtpu: 0.0.40
codegen_flags: <defaults>
</compile_context>

<pallas_src>
import numpy as np
import jax
import jax.numpy as jnp
from jax import lax
from jax.experimental import pallas as pl
from jax.experimental.pallas import tpu as pltpu


# ---------------------------------------------------------------------------
# Kernel
# ---------------------------------------------------------------------------
def _rnd2d_predictor_kernel(x_ref, m1_ref, b1_ref, rs4_ref, cs4_ref,
                            m2_ref, b2_ref, rs2_ref, cs2_ref,
                            wall_ref, pmask_ref, clp_ref, biasf_ref, out_ref):
    f32 = jnp.float32

    def mm(a, b):
        return jnp.dot(a, b, preferred_element_type=f32)

    def conv3x3_relu(x, m_ref, bias_row):
        # x: (R, Lin) lane-packed activations.  m_ref: (3, Lin, Lout) holds the
        # conv weights folded with the column-tap / channel structure
        # (index k <-> row tap dy = k - 1).  Row taps are XLU rolls along the
        # sublane axis with zero fill at the image border.
        R = x.shape[0]
        ridx = lax.broadcasted_iota(jnp.int32, x.shape, 0)
        x_dym1 = jnp.where(ridx > 0, pltpu.roll(x, 1, axis=0), 0.0)         # x[i-1, :]
        x_dyp1 = jnp.where(ridx < R - 1, pltpu.roll(x, R - 1, axis=0), 0.0)  # x[i+1, :]
        acc = mm(x, m_ref[1]) + bias_row
        acc = acc + mm(x_dym1, m_ref[0])
        acc = acc + mm(x_dyp1, m_ref[2])
        return jnp.maximum(acc, 0.0)

    def maxpool_rows(x, rs_ref, k):
        # rs_ref: (k*Rq, R) stacked row-selection matrix -> 1 matmul + (k-1) maxes.
        y = mm(rs_ref[...], x)
        rq = y.shape[0] // k
        out = y[0:rq, :]
        for d in range(1, k):
            out = jnp.maximum(out, y[d * rq:(d + 1) * rq, :])
        return out

    def maxpool_cols(x, cs_ref, k):
        # cs_ref: (L, k*Lq) stacked column-selection matrix -> 1 matmul + (k-1) maxes.
        y = mm(x, cs_ref[...])
        lq = y.shape[1] // k
        out = y[:, 0:lq]
        for d in range(1, k):
            out = jnp.maximum(out, y[:, d * lq:(d + 1) * lq])
        return out

    # Conv2d(1,4) + ReLU, then MaxPool(2,2) twice (== one 4x4 pool).
    x = x_ref[...]                                                 # (H, B*W)
    a1 = conv3x3_relu(x, m1_ref, b1_ref[...])                      # (H, B*4*W)
    a2 = maxpool_cols(maxpool_rows(a1, rs4_ref, 4), cs4_ref, 4)    # (H/4, B*4*W/4)

    # Conv2d(4,1) + ReLU, then MaxPool(2,2).
    a3 = conv3x3_relu(a2, m2_ref, b2_ref[...])                     # (H/4, B*W/4)
    a4 = maxpool_cols(maxpool_rows(a3, rs2_ref, 2), cs2_ref, 2)    # (H/8, B*W/8)

    # Flatten + Linear + Tanh, batched over all samples, single store.
    u = mm(a4, wall_ref[...])                                      # (H/8, B*(H/8)*RND)
    v = jnp.sum(u * pmask_ref[...], axis=0, keepdims=True)         # (1, B*(H/8)*RND)
    o = mm(v, clp_ref[...]) + biasf_ref[...]                       # (1, B*RND)
    out_ref[...] = jnp.tanh(o)


# ---------------------------------------------------------------------------
# Constant structure matrices (pure numpy, exact 0/1 values)
# ---------------------------------------------------------------------------
def _col_taps(n):
    # taps[k][w, j] = 1 iff w - j == k - 1   (3x3 "same" conv column structure)
    d = np.subtract.outer(np.arange(n), np.arange(n))
    return np.stack([(d == (k - 1)) for k in range(3)]).astype(np.float32)


def _col_sel(n, k):
    # sel[d][w, q] = 1 iff w == k*q + d      (stride-k column selection)
    w = np.arange(n)[:, None]
    q = np.arange(n // k)[None, :]
    return np.stack([(w == k * q + d) for d in range(k)]).astype(np.float32)


def _row_sel_stacked(n, k):
    # RS[d*(n//k) + p, h] = 1 iff h == k*p + d   (stacked stride-k row selection)
    nq = n // k
    p = np.arange(nq)[:, None]
    h = np.arange(n)[None, :]
    return np.concatenate([(h == k * p + d) for d in range(k)],
                          axis=0).astype(np.float32)


# ---------------------------------------------------------------------------
# Wrapper
# ---------------------------------------------------------------------------
def rnd2d_forward(obs_nchw, params):
    """Pallas TPU implementation of RND2D.forward (the predictor network)."""
    B, C, H, W = obs_nchw.shape
    assert C == 1 and H % 8 == 0 and W % 8 == 0
    C1 = params["w1"].shape[0]              # 4 hidden conv channels
    RND = params["wl"].shape[0]             # rnd_dim
    Hq, Wq = H // 4, W // 4
    Hq2, Wq2 = H // 8, W // 8
    f32 = jnp.float32

    w1 = params["w1"].astype(f32)           # (C1, 1, 3, 3)
    b1 = params["b1"].astype(f32)           # (C1,)
    w2 = params["w2"].astype(f32)           # (1, C1, 3, 3)
    b2 = params["b2"].astype(f32)           # (1,)
    wl = params["wl"].astype(f32)           # (RND, Hq2*Wq2)
    bl = params["bl"].astype(f32)           # (RND,)

    # Lane-pack the batch: x[i, b*W + w] = obs[b, 0, i, w].
    x = jnp.transpose(obs_nchw.astype(f32)[:, 0], (1, 0, 2)).reshape(H, B * W)

    eye_b = np.eye(B, dtype=np.float32)
    eye_bc = np.eye(B * C1, dtype=np.float32)

    # conv1: column taps + output channels folded -> (3, B*W, B*C1*W).
    # (weight placement done with exact 0/1 multiplies, no XLA dot rounding)
    taps_w = jnp.asarray(_col_taps(W))                                   # (3, W, W)
    w1k = jnp.transpose(w1[:, 0], (1, 0, 2))                             # [k, c, kw]
    m1_cc = jnp.sum(w1k[:, :, :, None, None] * taps_w[None, None], axis=2)
    m1_s = jnp.transpose(m1_cc, (0, 2, 1, 3)).reshape(3, W, C1 * W)      # [k, w, c*W+j]
    m1 = jnp.stack([jnp.kron(jnp.asarray(eye_b), m1_s[k]) for k in range(3)])
    b1_row = jnp.tile(jnp.repeat(b1, W), B)[None, :]                     # (1, B*C1*W)

    # 4x4 max-pool (== two 2x2 pools), stacked 0/1 selection matrices.
    rs4 = jnp.asarray(_row_sel_stacked(H, 4))                            # (H, H)
    sel4 = _col_sel(W, 4)
    cs4 = jnp.asarray(np.concatenate(
        [np.kron(eye_bc, sel4[d]) for d in range(4)], axis=1))           # (B*C1*W, 4*B*C1*Wq)

    # conv2: column taps + input-channel reduction folded -> (3, B*C1*Wq, B*Wq).
    taps_wq = jnp.asarray(_col_taps(Wq))                                 # (3, Wq, Wq)
    w2k = jnp.transpose(w2[0], (1, 0, 2))                                # [k, c, kw]
    m2_cc = jnp.sum(w2k[:, :, :, None, None] * taps_wq[None, None], axis=2)
    m2_s = m2_cc.reshape(3, C1 * Wq, Wq)                                 # [k, c*Wq+q, j]
    m2 = jnp.stack([jnp.kron(jnp.asarray(eye_b), m2_s[k]) for k in range(3)])
    b2_row = jnp.broadcast_to(b2.reshape(1, 1), (1, B * Wq))             # (1, B*Wq)

    # final 2x2 max-pool.
    rs2 = jnp.asarray(_row_sel_stacked(Hq, 2))                           # (Hq, Hq)
    sel2 = _col_sel(Wq, 2)
    cs2 = jnp.asarray(np.concatenate(
        [np.kron(eye_b, sel2[d]) for d in range(2)], axis=1))            # (B*Wq, 2*B*Wq2)

    # Flatten + Linear folded for a fully batched finish:
    #   U = A4 @ wall ; V = sum_rows(U * pmask) ; out = V @ clp + bias.
    wl3 = wl.reshape(RND, Hq2, Wq2)                                      # [r, p2, q2]
    ws = jnp.transpose(wl3, (2, 1, 0)).reshape(Wq2, Hq2 * RND)           # [q2, p2*RND+r]
    wall = jnp.kron(jnp.asarray(eye_b), ws)                              # (B*Wq2, B*Hq2*RND)
    cols = np.arange(B * Hq2 * RND)
    pmask = jnp.asarray((np.arange(Hq2)[:, None]
                         == ((cols // RND) % Hq2)[None, :]).astype(np.float32))
    ocols = np.arange(B * RND)
    clp = jnp.asarray((((cols // (Hq2 * RND))[:, None] == (ocols // RND)[None, :])
                       & ((cols % RND)[:, None] == (ocols % RND)[None, :])
                       ).astype(np.float32))                             # (B*Hq2*RND, B*RND)
    bias_f = jnp.tile(bl, B)[None, :]                                    # (1, B*RND)

    vmem = pl.BlockSpec(memory_space=pltpu.MemorySpace.VMEM)
    out_flat = pl.pallas_call(
        _rnd2d_predictor_kernel,
        out_shape=jax.ShapeDtypeStruct((1, B * RND), f32),
        in_specs=[vmem] * 13,
        out_specs=vmem,
    )(x, m1, b1_row, rs4, cs4, m2, b2_row, rs2, cs2, wall, pmask, clp, bias_f)

    return out_flat.reshape(B, RND)


# ---------------------------------------------------------------------------
# Plain-JAX reference (eval-mode dropout)
# ---------------------------------------------------------------------------
def rnd2d_forward_reference(obs_nchw, params):
    dn = ("NCHW", "OIHW", "NCHW")
    x = obs_nchw.astype(jnp.float32)
    y = lax.conv_general_dilated(x, params["w1"], (1, 1), "SAME",
                                 dimension_numbers=dn,
                                 precision=lax.Precision.HIGHEST)
    y = jnp.maximum(y + params["b1"].reshape(1, -1, 1, 1), 0.0)
    y = lax.reduce_window(y, -jnp.inf, lax.max, (1, 1, 2, 2), (1, 1, 2, 2), "VALID")
    y = lax.reduce_window(y, -jnp.inf, lax.max, (1, 1, 2, 2), (1, 1, 2, 2), "VALID")
    y = lax.conv_general_dilated(y, params["w2"], (1, 1), "SAME",
                                 dimension_numbers=dn,
                                 precision=lax.Precision.HIGHEST)
    y = jnp.maximum(y + params["b2"].reshape(1, -1, 1, 1), 0.0)
    y = lax.reduce_window(y, -jnp.inf, lax.max, (1, 1, 2, 2), (1, 1, 2, 2), "VALID")
    y = y.reshape(y.shape[0], -1)
    return jnp.tanh(jnp.dot(y, params["wl"].T, precision=lax.Precision.HIGHEST)
                    + params["bl"])


if __name__ == "__main__":
    # Small env consistent with the module: width = height = 32 -> dense_nodes = 16.
    B, C, H, W = 2, 1, 32, 32
    rnd_dim = 16
    dense_nodes = (H // 8) * (W // 8)

    key = jax.random.PRNGKey(0)
    k = jax.random.split(key, 7)
    params = {
        "w1": 0.3 * jax.random.normal(k[0], (4, 1, 3, 3), jnp.float32),
        "b1": 0.1 * jax.random.normal(k[1], (4,), jnp.float32),
        "w2": 0.3 * jax.random.normal(k[2], (1, 4, 3, 3), jnp.float32),
        "b2": 0.1 * jax.random.normal(k[3], (1,), jnp.float32),
        "wl": 0.2 * jax.random.normal(k[4], (rnd_dim, dense_nodes), jnp.float32),
        "bl": 0.1 * jax.random.normal(k[5], (rnd_dim,), jnp.float32),
    }
    # Binary CA-universe-like observation (NCHW, single channel).
    obs = (jax.random.uniform(k[6], (B, C, H, W)) < 0.5).astype(jnp.float32)

    out = jax.block_until_ready(rnd2d_forward(obs, params))
    ref = jax.block_until_ready(rnd2d_forward_reference(obs, params))

    assert out.shape == (B, rnd_dim) and out.dtype == jnp.float32
    # All kernel math is f32 (exact 0/1 structure matrices + f32 MXU matmuls),
    # so a tight tolerance actually validates the layout/folding refactor.
    max_err = float(jnp.max(jnp.abs(out - ref)))
    if max_err > 1e-4:
        raise AssertionError(f"kernel mismatch vs JAX reference: max_err={max_err}")
    print("KERNEL_OK")
</pallas_src>

<mosaic_0001>
module attributes {stable_mosaic.version = 11 : i64} {
  func.func @_rnd2d_predictor_kernel(%arg0: memref<32x64xf32, #tpu.memory_space<vmem>>, %arg1: memref<3x64x256xf32, #tpu.memory_space<vmem>>, %arg2: memref<1x256xf32, #tpu.memory_space<vmem>>, %arg3: memref<32x32xf32, #tpu.memory_space<vmem>>, %arg4: memref<256x256xf32, #tpu.memory_space<vmem>>, %arg5: memref<3x64x16xf32, #tpu.memory_space<vmem>>, %arg6: memref<1x16xf32, #tpu.memory_space<vmem>>, %arg7: memref<8x8xf32, #tpu.memory_space<vmem>>, %arg8: memref<16x16xf32, #tpu.memory_space<vmem>>, %arg9: memref<8x128xf32, #tpu.memory_space<vmem>>, %arg10: memref<4x128xf32, #tpu.memory_space<vmem>>, %arg11: memref<128x32xf32, #tpu.memory_space<vmem>>, %arg12: memref<1x32xf32, #tpu.memory_space<vmem>>, %arg13: memref<1x32xf32, #tpu.memory_space<vmem>>) attributes {dimension_semantics = [], scalar_prefetch = 0 : i64, scratch_operands = 0 : i64, tpu.core_type = #tpu.core_type<tc>} {
    %c0 = arith.constant 0 : index
    %c0_0 = arith.constant 0 : index
    %0 = vector.load %arg0[%c0, %c0_0] : memref<32x64xf32, #tpu.memory_space<vmem>>, vector<32x64xf32>
    %c0_1 = arith.constant 0 : index
    %c0_2 = arith.constant 0 : index
    %1 = vector.load %arg2[%c0_1, %c0_2] : memref<1x256xf32, #tpu.memory_space<vmem>>, vector<1x256xf32>
    %2 = tpu.iota {dimensions = array<i32: 0>} : vector<32x64xi32>
    %c0_i32 = arith.constant 0 : i32
    %3 = vector.broadcast %c0_i32 : i32 to vector<32x64xi32>
    %4 = arith.cmpi sgt, %2, %3 : vector<32x64xi32>
    %c1_i32 = arith.constant 1 : i32
    %5 = tpu.dynamic_rotate %0 by %c1_i32 dim 0 : vector<32x64xf32>, i32 -> vector<32x64xf32>
    %cst = arith.constant 0.000000e+00 : f32
    %6 = vector.broadcast %cst : f32 to vector<32x64xf32>
    %7 = arith.select %4, %5, %6 : vector<32x64xi1>, vector<32x64xf32>
    %c31_i32 = arith.constant 31 : i32
    %8 = vector.broadcast %c31_i32 : i32 to vector<32x64xi32>
    %9 = arith.cmpi slt, %2, %8 : vector<32x64xi32>
    %c31_i32_3 = arith.constant 31 : i32
    %10 = tpu.dynamic_rotate %0 by %c31_i32_3 dim 0 : vector<32x64xf32>, i32 -> vector<32x64xf32>
    %cst_4 = arith.constant 0.000000e+00 : f32
    %11 = vector.broadcast %cst_4 : f32 to vector<32x64xf32>
    %12 = arith.select %9, %10, %11 : vector<32x64xi1>, vector<32x64xf32>
    %c1 = arith.constant 1 : index
    %c0_5 = arith.constant 0 : index
    %c0_6 = arith.constant 0 : index
    %13 = vector.load %arg1[%c1, %c0_5, %c0_6] : memref<3x64x256xf32, #tpu.memory_space<vmem>>, vector<1x64x256xf32>
    %14 = vector.shape_cast %13 : vector<1x64x256xf32> to vector<64x256xf32>
    %cst_7 = arith.constant dense<0.000000e+00> : vector<32x256xf32>
    %15 = tpu.matmul %0, %14, %cst_7 {dimension_numbers = #tpu.dot_dimension_numbers<[1], [0], [0], [1], [0, 0, 1, 1], [], []>} : vector<32x64xf32>, vector<64x256xf32>, vector<32x256xf32> -> vector<32x256xf32>
    %16 = vector.broadcast %1 : vector<1x256xf32> to vector<32x256xf32>
    %17 = arith.addf %15, %16 : vector<32x256xf32>
    %c0_8 = arith.constant 0 : index
    %c0_9 = arith.constant 0 : index
    %c0_10 = arith.constant 0 : index
    %18 = vector.load %arg1[%c0_8, %c0_9, %c0_10] : memref<3x64x256xf32, #tpu.memory_space<vmem>>, vector<1x64x256xf32>
    %19 = vector.shape_cast %18 : vector<1x64x256xf32> to vector<64x256xf32>
    %cst_11 = arith.constant dense<0.000000e+00> : vector<32x256xf32>
    %20 = tpu.matmul %7, %19, %cst_11 {dimension_numbers = #tpu.dot_dimension_numbers<[1], [0], [0], [1], [0, 0, 1, 1], [], []>} : vector<32x64xf32>, vector<64x256xf32>, vector<32x256xf32> -> vector<32x256xf32>
    %21 = arith.addf %17, %20 : vector<32x256xf32>
    %c2 = arith.constant 2 : index
    %c0_12 = arith.constant 0 : index
    %c0_13 = arith.constant 0 : index
    %22 = vector.load %arg1[%c2, %c0_12, %c0_13] : memref<3x64x256xf32, #tpu.memory_space<vmem>>, vector<1x64x256xf32>
    %23 = vector.shape_cast %22 : vector<1x64x256xf32> to vector<64x256xf32>
    %cst_14 = arith.constant dense<0.000000e+00> : vector<32x256xf32>
    %24 = tpu.matmul %12, %23, %cst_14 {dimension_numbers = #tpu.dot_dimension_numbers<[1], [0], [0], [1], [0, 0, 1, 1], [], []>} : vector<32x64xf32>, vector<64x256xf32>, vector<32x256xf32> -> vector<32x256xf32>
    %25 = arith.addf %21, %24 : vector<32x256xf32>
    %cst_15 = arith.constant 0.000000e+00 : f32
    %26 = vector.broadcast %cst_15 : f32 to vector<32x256xf32>
    %27 = arith.maximumf %25, %26 : vector<32x256xf32>
    %c0_16 = arith.constant 0 : index
    %c0_17 = arith.constant 0 : index
    %28 = vector.load %arg3[%c0_16, %c0_17] : memref<32x32xf32, #tpu.memory_space<vmem>>, vector<32x32xf32>
    %cst_18 = arith.constant dense<0.000000e+00> : vector<32x256xf32>
    %29 = tpu.matmul %28, %27, %cst_18 {dimension_numbers = #tpu.dot_dimension_numbers<[1], [0], [0], [1], [0, 0, 1, 1], [], []>} : vector<32x32xf32>, vector<32x256xf32>, vector<32x256xf32> -> vector<32x256xf32>
    %30 = vector.extract_strided_slice %29 {offsets = [0, 0], sizes = [8, 256], strides = [1, 1]} : vector<32x256xf32> to vector<8x256xf32>
    %31 = vector.extract_strided_slice %29 {offsets = [8, 0], sizes = [8, 256], strides = [1, 1]} : vector<32x256xf32> to vector<8x256xf32>
    %32 = arith.maximumf %30, %31 : vector<8x256xf32>
    %33 = vector.extract_strided_slice %29 {offsets = [16, 0], sizes = [8, 256], strides = [1, 1]} : vector<32x256xf32> to vector<8x256xf32>
    %34 = arith.maximumf %32, %33 : vector<8x256xf32>
    %35 = vector.extract_strided_slice %29 {offsets = [24, 0], sizes = [8, 256], strides = [1, 1]} : vector<32x256xf32> to vector<8x256xf32>
    %36 = arith.maximumf %34, %35 : vector<8x256xf32>
    %c0_19 = arith.constant 0 : index
    %c0_20 = arith.constant 0 : index
    %37 = vector.load %arg4[%c0_19, %c0_20] : memref<256x256xf32, #tpu.memory_space<vmem>>, vector<256x256xf32>
    %cst_21 = arith.constant dense<0.000000e+00> : vector<8x256xf32>
    %38 = tpu.matmul %36, %37, %cst_21 {dimension_numbers = #tpu.dot_dimension_numbers<[1], [0], [0], [1], [0, 0, 1, 1], [], []>} : vector<8x256xf32>, vector<256x256xf32>, vector<8x256xf32> -> vector<8x256xf32>
    %39 = vector.extract_strided_slice %38 {offsets = [0, 0], sizes = [8, 64], strides = [1, 1]} : vector<8x256xf32> to vector<8x64xf32>
    %40 = vector.extract_strided_slice %38 {offsets = [0, 64], sizes = [8, 64], strides = [1, 1]} : vector<8x256xf32> to vector<8x64xf32>
    %41 = arith.maximumf %39, %40 : vector<8x64xf32>
    %42 = vector.extract_strided_slice %38 {offsets = [0, 128], sizes = [8, 64], strides = [1, 1]} : vector<8x256xf32> to vector<8x64xf32>
    %43 = arith.maximumf %41, %42 : vector<8x64xf32>
    %44 = vector.extract_strided_slice %38 {offsets = [0, 192], sizes = [8, 64], strides = [1, 1]} : vector<8x256xf32> to vector<8x64xf32>
    %45 = arith.maximumf %43, %44 : vector<8x64xf32>
    %c0_22 = arith.constant 0 : index
    %c0_23 = arith.constant 0 : index
    %46 = vector.load %arg6[%c0_22, %c0_23] : memref<1x16xf32, #tpu.memory_space<vmem>>, vector<1x16xf32>
    %47 = tpu.iota {dimensions = array<i32: 0>} : vector<8x64xi32>
    %c0_i32_24 = arith.constant 0 : i32
    %48 = vector.broadcast %c0_i32_24 : i32 to vector<8x64xi32>
    %49 = arith.cmpi sgt, %47, %48 : vector<8x64xi32>
    %c1_i32_25 = arith.constant 1 : i32
    %50 = tpu.dynamic_rotate %45 by %c1_i32_25 dim 0 : vector<8x64xf32>, i32 -> vector<8x64xf32>
    %cst_26 = arith.constant 0.000000e+00 : f32
    %51 = vector.broadcast %cst_26 : f32 to vector<8x64xf32>
    %52 = arith.select %49, %50, %51 : vector<8x64xi1>, vector<8x64xf32>
    %c7_i32 = arith.constant 7 : i32
    %53 = vector.broadcast %c7_i32 : i32 to vector<8x64xi32>
    %54 = arith.cmpi slt, %47, %53 : vector<8x64xi32>
    %c7_i32_27 = arith.constant 7 : i32
    %55 = tpu.dynamic_rotate %45 by %c7_i32_27 dim 0 : vector<8x64xf32>, i32 -> vector<8x64xf32>
    %cst_28 = arith.constant 0.000000e+00 : f32
    %56 = vector.broadcast %cst_28 : f32 to vector<8x64xf32>
    %57 = arith.select %54, %55, %56 : vector<8x64xi1>, vector<8x64xf32>
    %c1_29 = arith.constant 1 : index
    %c0_30 = arith.constant 0 : index
    %c0_31 = arith.constant 0 : index
    %58 = vector.load %arg5[%c1_29, %c0_30, %c0_31] : memref<3x64x16xf32, #tpu.memory_space<vmem>>, vector<1x64x16xf32>
    %59 = vector.shape_cast %58 : vector<1x64x16xf32> to vector<64x16xf32>
    %cst_32 = arith.constant dense<0.000000e+00> : vector<8x16xf32>
    %60 = tpu.matmul %45, %59, %cst_32 {dimension_numbers = #tpu.dot_dimension_numbers<[1], [0], [0], [1], [0, 0, 1, 1], [], []>} : vector<8x64xf32>, vector<64x16xf32>, vector<8x16xf32> -> vector<8x16xf32>
    %61 = vector.broadcast %46 : vector<1x16xf32> to vector<8x16xf32>
    %62 = arith.addf %60, %61 : vector<8x16xf32>
    %c0_33 = arith.constant 0 : index
    %c0_34 = arith.constant 0 : index
    %c0_35 = arith.constant 0 : index
    %63 = vector.load %arg5[%c0_33, %c0_34, %c0_35] : memref<3x64x16xf32, #tpu.memory_space<vmem>>, vector<1x64x16xf32>
    %64 = vector.shape_cast %63 : vector<1x64x16xf32> to vector<64x16xf32>
    %cst_36 = arith.constant dense<0.000000e+00> : vector<8x16xf32>
    %65 = tpu.matmul %52, %64, %cst_36 {dimension_numbers = #tpu.dot_dimension_numbers<[1], [0], [0], [1], [0, 0, 1, 1], [], []>} : vector<8x64xf32>, vector<64x16xf32>, vector<8x16xf32> -> vector<8x16xf32>
    %66 = arith.addf %62, %65 : vector<8x16xf32>
    %c2_37 = arith.constant 2 : index
    %c0_38 = arith.constant 0 : index
    %c0_39 = arith.constant 0 : index
    %67 = vector.load %arg5[%c2_37, %c0_38, %c0_39] : memref<3x64x16xf32, #tpu.memory_space<vmem>>, vector<1x64x16xf32>
    %68 = vector.shape_cast %67 : vector<1x64x16xf32> to vector<64x16xf32>
    %cst_40 = arith.constant dense<0.000000e+00> : vector<8x16xf32>
    %69 = tpu.matmul %57, %68, %cst_40 {dimension_numbers = #tpu.dot_dimension_numbers<[1], [0], [0], [1], [0, 0, 1, 1], [], []>} : vector<8x64xf32>, vector<64x16xf32>, vector<8x16xf32> -> vector<8x16xf32>
    %70 = arith.addf %66, %69 : vector<8x16xf32>
    %cst_41 = arith.constant 0.000000e+00 : f32
    %71 = vector.broadcast %cst_41 : f32 to vector<8x16xf32>
    %72 = arith.maximumf %70, %71 : vector<8x16xf32>
    %c0_42 = arith.constant 0 : index
    %c0_43 = arith.constant 0 : index
    %73 = vector.load %arg7[%c0_42, %c0_43] : memref<8x8xf32, #tpu.memory_space<vmem>>, vector<8x8xf32>
    %cst_44 = arith.constant dense<0.000000e+00> : vector<8x16xf32>
    %74 = tpu.matmul %73, %72, %cst_44 {dimension_numbers = #tpu.dot_dimension_numbers<[1], [0], [0], [1], [0, 0, 1, 1], [], []>} : vector<8x8xf32>, vector<8x16xf32>, vector<8x16xf32> -> vector<8x16xf32>
    %75 = vector.extract_strided_slice %74 {offsets = [0, 0], sizes = [4, 16], strides = [1, 1]} : vector<8x16xf32> to vector<4x16xf32>
    %76 = vector.extract_strided_slice %74 {offsets = [4, 0], sizes = [4, 16], strides = [1, 1]} : vector<8x16xf32> to vector<4x16xf32>
    %77 = arith.maximumf %75, %76 : vector<4x16xf32>
    %c0_45 = arith.constant 0 : index
    %c0_46 = arith.constant 0 : index
    %78 = vector.load %arg8[%c0_45, %c0_46] : memref<16x16xf32, #tpu.memory_space<vmem>>, vector<16x16xf32>
    %cst_47 = arith.constant dense<0.000000e+00> : vector<4x16xf32>
    %79 = tpu.matmul %77, %78, %cst_47 {dimension_numbers = #tpu.dot_dimension_numbers<[1], [0], [0], [1], [0, 0, 1, 1], [], []>} : vector<4x16xf32>, vector<16x16xf32>, vector<4x16xf32> -> vector<4x16xf32>
    %80 = vector.extract_strided_slice %79 {offsets = [0, 0], sizes = [4, 8], strides = [1, 1]} : vector<4x16xf32> to vector<4x8xf32>
    %81 = vector.extract_strided_slice %79 {offsets = [0, 8], sizes = [4, 8], strides = [1, 1]} : vector<4x16xf32> to vector<4x8xf32>
    %82 = arith.maximumf %80, %81 : vector<4x8xf32>
    %c0_48 = arith.constant 0 : index
    %c0_49 = arith.constant 0 : index
    %83 = vector.load %arg9[%c0_48, %c0_49] : memref<8x128xf32, #tpu.memory_space<vmem>>, vector<8x128xf32>
    %cst_50 = arith.constant dense<0.000000e+00> : vector<4x128xf32>
    %84 = tpu.matmul %82, %83, %cst_50 {dimension_numbers = #tpu.dot_dimension_numbers<[1], [0], [0], [1], [0, 0, 1, 1], [], []>} : vector<4x8xf32>, vector<8x128xf32>, vector<4x128xf32> -> vector<4x128xf32>
    %c0_51 = arith.constant 0 : index
    %c0_52 = arith.constant 0 : index
    %85 = vector.load %arg10[%c0_51, %c0_52] : memref<4x128xf32, #tpu.memory_space<vmem>>, vector<4x128xf32>
    %86 = arith.mulf %84, %85 : vector<4x128xf32>
    %cst_53 = arith.constant dense<0.000000e+00> : vector<128xf32>
    %87 = vector.multi_reduction <add>, %86, %cst_53 [0] : vector<4x128xf32> to vector<128xf32>
    %88 = vector.shape_cast %87 : vector<128xf32> to vector<1x128xf32>
    %c0_54 = arith.constant 0 : index
    %c0_55 = arith.constant 0 : index
    %89 = vector.load %arg11[%c0_54, %c0_55] : memref<128x32xf32, #tpu.memory_space<vmem>>, vector<128x32xf32>
    %cst_56 = arith.constant dense<0.000000e+00> : vector<1x32xf32>
    %90 = tpu.matmul %88, %89, %cst_56 {dimension_numbers = #tpu.dot_dimension_numbers<[1], [0], [0], [1], [0, 0, 1, 1], [], []>} : vector<1x128xf32>, vector<128x32xf32>, vector<1x32xf32> -> vector<1x32xf32>
    %c0_57 = arith.constant 0 : index
    %c0_58 = arith.constant 0 : index
    %91 = vector.load %arg12[%c0_57, %c0_58] : memref<1x32xf32, #tpu.memory_space<vmem>>, vector<1x32xf32>
    %92 = arith.addf %90, %91 : vector<1x32xf32>
    %93 = math.tanh %92 : vector<1x32xf32>
    %c0_59 = arith.constant 0 : index
    %c0_60 = arith.constant 0 : index
    %94 = vector.load %arg13[%c0_59, %c0_60] : memref<1x32xf32, #tpu.memory_space<vmem>>, vector<1x32xf32>
    tpu.vector_store %arg13[%c0_59, %c0_60], %93 {strides = array<i32>} : memref<1x32xf32, #tpu.memory_space<vmem>>, vector<1x32xf32>,
    return
  }
}

</mosaic_0001>

<bundles_post_ra>
// kernel: tpu_custom_call.1
= control target key start
LH: loop header
LB: loop body
LE: loop exit
PB: predicated region body
PF: predicated region fallthrough
CT: control target
= control target key end

     0   :  { %18 = vsyncpa [#allocation3], 0  ;;  %s2347_s0 = inlined_call_operand.hbm [shape: f32[32,64], index: 0, kind: input, shape index: {}]   ;;  %s2348_s1 = inlined_call_operand.vmem [shape: f32[3,64,256], index: 1, kind: input, shape index: {}]   ;;  %s2349_s2 = inlined_call_operand.hbm [shape: f32[1,256], index: 2, kind: input, shape index: {}]   ;;  %s2350_s3 = inlined_call_operand.hbm [shape: f32[32,32], index: 3, kind: input, shape index: {}]   ;;  %s2351_s4 = inlined_call_operand.hbm [shape: f32[256,256], index: 4, kind: input, shape index: {}]   ;;  %s2352_s5 = inlined_call_operand.vmem [shape: f32[3,64,16], index: 5, kind: input, shape index: {}]   ;;  %s2353_s6 = inlined_call_operand.hbm [shape: f32[1,16], index: 6, kind: input, shape index: {}]   ;;  %s2354_s7 = inlined_call_operand.vmem [shape: f32[8,8], index: 7, kind: input, shape index: {}]   ;;  %s2355_s8 = inlined_call_operand.vmem [shape: f32[16,16], index: 8, kind: input, shape index: {}]   ;;  %s2356_s9 = inlined_call_operand.vmem [shape: f32[8,128], index: 9, kind: input, shape index: {}]   ;;  %s2357_s10 = inlined_call_operand.hbm [shape: f32[4,128], index: 10, kind: input, shape index: {}]   ;;  %s2358_s11 = inlined_call_operand.vmem [shape: f32[128,32], index: 11, kind: input, shape index: {}]   ;;  %s2359_s12 = inlined_call_operand.vmem [shape: f32[1,32], index: 12, kind: input, shape index: {}]   ;;  %s2360_s13 = inlined_call_operand.hbm [shape: f32[1,32], index: 13, kind: output, shape index: {}]  }
   0x1   :  { %19 = vsyncpa [#allocation6], 0 }
   0x2   :  { %20 = vsyncpa [#allocation9], 0 }
   0x3   :  { %21 = vsyncpa [#allocation12], 0 }
   0x4   :  { %22 = vsyncpa [#allocation4], 0  ;;  %s1821_s25 = smov [#allocation5]   ;;  %s1822_s27 = smov [#allocation8]  }
   0x5   :  { %s43_s26 = sshll.u32 %s1821_s25, 4  ;;  %s64_s28 = sshll.u32 %s1822_s27, 4  ;;  %s44_s26 = int_to_ptr.vmem [resolvable:$true] %s43_s26  ;;  %s65_s28 = int_to_ptr.vmem [resolvable:$true] %s64_s28 }
   0x6   :  { %s1679_s29 = scalar_lea.vmem %s44_s26, 32  ;;  %p1684_p1 = scmp.lt.s32.totalorder %s44_s26, %s44_s26 }
   0x7   :  { %p1680_p0 = scmp.ne.s32.totalorder %s44_s26, %s1679_s29  ;;  %p1685_p2 = scmp.lt.s32.totalorder %s1679_s29, %s1679_s29 }
   0x9   :  { %p1686_p3 = por %p1685_p2, %p1684_p1 }
   0xb   :  { %p1687_p4 = pnand %p1686_p3, %p1680_p0 }
   0xd   :  { %1690 = shalt.err (!%p1687_p4)
}
   0xe   :  { %46 = dma.hbm_to_vmem [thread:$0]  %s2349_s2, 32, %s44_s26, [#allocation6]  }
   0xf   :  { %s1699_s15 = scalar_lea.vmem %s65_s28, 8192  ;;  %p1704_p6 = scmp.lt.s32.totalorder %s65_s28, %s65_s28 }
  0x10   :  { %p1700_p5 = scmp.ne.s32.totalorder %s65_s28, %s1699_s15  ;;  %p1705_p7 = scmp.lt.s32.totalorder %s1699_s15, %s1699_s15 }
  0x12   :  { %p1706_p8 = por %p1705_p7, %p1704_p6 }
  0x14   :  { %p1707_p9 = pnand %p1706_p8, %p1700_p5 }
  0x16   :  { %1710 = shalt.err (!%p1707_p9)
}
  0x17   :  { %s1823_s16 = smov 256   ;;  %s1824_s17 = smov 16  }
  0x18   :  { %70 = dma.hbm_to_vmem [thread:$0]  %s2351_s4, 8192, %s65_s28, [#allocation9], %s1823_s16, %s1823_s16, %s1824_s17  }
  0x19   :  { %s1825_s20 = smov [#allocation2]  }
  0x1a   :  { %s28_s21 = sshll.u32 %s1825_s20, 4  ;;  %s29_s21 = int_to_ptr.vmem [resolvable:$true] %s28_s21 }
  0x1b   :  { %s1719_s22 = scalar_lea.vmem %s29_s21, 512  ;;  %p1724_p11 = scmp.lt.s32.totalorder %s29_s21, %s29_s21 }
  0x1c   :  { %p1720_p10 = scmp.ne.s32.totalorder %s29_s21, %s1719_s22  ;;  %p1725_p12 = scmp.lt.s32.totalorder %s1719_s22, %s1719_s22 }
  0x1e   :  { %p1726_p13 = por %p1725_p12, %p1724_p11 }
  0x20   :  { %p1727_p0 = pnand %p1726_p13, %p1720_p10 }
  0x22   :  { %1730 = shalt.err (!%p1727_p0)
}
  0x23   :  { %s1826_s2 = smov 128   ;;  %s1827_s23 = smov 8  }
  0x24   :  { %34 = dma.hbm_to_vmem [thread:$0]  %s2347_s0, 512, %s29_s21, [#allocation3], %s1826_s2, %s1826_s2, %s1827_s23  }
  0x25   :  { %s1828_s26 = smov [#allocation7]   ;;  %s1829_s4 = smov [#allocation10]  }
  0x26   :  { %s52_s27 = sshll.u32 %s1828_s26, 4  ;;  %s79_s28 = sshll.u32 %s1829_s4, 4  ;;  %s53_s27 = int_to_ptr.vmem [resolvable:$true] %s52_s27  ;;  %s80_s28 = int_to_ptr.vmem [resolvable:$true] %s79_s28 }
  0x27   :  { %s1739_s29 = scalar_lea.vmem %s53_s27, 512  ;;  %p1744_p2 = scmp.lt.s32.totalorder %s53_s27, %s53_s27 }
  0x28   :  { %p1740_p1 = scmp.ne.s32.totalorder %s53_s27, %s1739_s29  ;;  %p1745_p3 = scmp.lt.s32.totalorder %s1739_s29, %s1739_s29 }
  0x2a   :  { %p1746_p4 = por %p1745_p3, %p1744_p2 }
  0x2c   :  { %p1747_p5 = pnand %p1746_p4, %p1740_p1 }
  0x2e   :  { %1750 = shalt.err (!%p1747_p5)
}
  0x2f   :  { %58 = dma.hbm_to_vmem [thread:$0]  %s2350_s3, 512, %s53_s27, [#allocation6], %s1826_s2, %s1826_s2, %s1827_s23  }
  0x30   :  { %s1759_s15 = scalar_lea.vmem %s80_s28, 16  ;;  %s1763_s0 = scalar_lea.vmem %s80_s28, 32 }
  0x31   :  { %p1760_p6 = scmp.ne.s32.totalorder %s80_s28, %s1759_s15  ;;  %p1764_p7 = scmp.lt.s32.totalorder %s80_s28, %s80_s28 }
  0x32   :  { %p1765_p8 = scmp.lt.s32.totalorder %s1763_s0, %s1759_s15 }
  0x34   :  { %p1766_p9 = por %p1765_p8, %p1764_p7 }
  0x36   :  { %p1767_p10 = pnand %p1766_p9, %p1760_p6 }
  0x38   :  { %1770 = shalt.err (!%p1767_p10)
}
  0x39   :  { %82 = dma.hbm_to_vmem [thread:$0]  %s2353_s6, 16, %s80_s28, [#allocation9]  }
  0x3a   :  { %s1830_s18 = smov [#allocation11]  }
  0x3b   :  { %s95_s19 = sshll.u32 %s1830_s18, 4  ;;  %s96_s19 = int_to_ptr.vmem [resolvable:$true] %s95_s19 }
  0x3c   :  { %s1779_s20 = scalar_lea.vmem %s96_s19, 64  ;;  %p1784_p12 = scmp.lt.s32.totalorder %s96_s19, %s96_s19 }
  0x3d   :  { %p1780_p11 = scmp.ne.s32.totalorder %s96_s19, %s1779_s20  ;;  %p1785_p13 = scmp.lt.s32.totalorder %s1779_s20, %s1779_s20 }
  0x3f   :  { %p1786_p0 = por %p1785_p13, %p1784_p12 }
  0x41   :  { %p1787_p1 = pnand %p1786_p0, %p1780_p11 }
  0x43   :  { %1790 = shalt.err (!%p1787_p1)
}
  0x44   :  { %98 = dma.hbm_to_vmem [thread:$0]  %s2357_s10, 64, %s96_s19, [#allocation12]  }
  0x45   :  { %1811 = dma.done.wait [#allocation3], 512  }
  0x46   :  { %1812 = vsyncadd [#allocation3], 4294966784 }
  0x47   :  { %1813 = dma.done.wait [#allocation6], 544  }
  0x48   :  { %1814 = vsyncadd [#allocation6], 4294966752 }
  0x49   :  { %1815 = dma.done.wait [#allocation9], 8208  }
  0x4a   :  { %1816 = vsyncadd [#allocation9], 4294959088 }
  0x4b   :  { %1817 = dma.done.wait [#allocation12], 64  }
  0x4c   :  { %1818 = vsyncadd [#allocation12], 4294967232  ;;  %v1831_v0 = vmov 0.0   ;;  %v1438_v1 = vld [vmem:[%s2348_s1 + $0xf8] sm:$0xff]  ;;  %v1437_v2 = vld [vmem:[%s2348_s1 + $0xf0] sm:$0xff]  ;;  %vm193_vm0 = vcmask 523264   ;;  %v126_v21 = vlaneseq }
  0x4d   :  { %270 = vmatprep.mubr.f32.mxu0 %v1831_v0  ;;  %635 = vmatprep.mubr.f32.mxu1 %v1831_v0  ;;  %v1436_v3 = vld [vmem:[%s2348_s1 + $0xe8] sm:$0xff]  ;;  %v1435_v4 = vld [vmem:[%s2348_s1 + $0xe0] sm:$0xff]  ;;  %v1434_v5 = vld [vmem:[%s2348_s1 + $0xd8] sm:$0xff]  ;;  %vm558_vm5 = vcmask 261120   ;;  %vm1832_vm6 = vmmov 0   ;;  %s1833_s19 = smov 64  }
  0x4e   :  { %222 = vmatprep.subr.mxu0 %v1438_v1  ;;  %v1433_v6 = vld [vmem:[%s2348_s1 + $0xd0] sm:$0xff]  ;;  %v1432_v7 = vld [vmem:[%s2348_s1 + $0xc8] sm:$0xff]  ;;  %v1431_v8 = vld [vmem:[%s2348_s1 + $0xc0] sm:$0xff]  ;;  %v2004_v28 = vshrl.u32 %v126_v21, 7  ;;  %vm1072_vm7 = vcmask 64512   ;;  %vm1152_vm8 = vcmask 130048  }
  0x4f   :  { %223 = vmatpush1.msra.mxu0 %v1437_v2  ;;  %v1430_v9 = vld [vmem:[%s2348_s1 + $0xb8] sm:$0xff]  ;;  %v1429_v10 = vld [vmem:[%s2348_s1 + $0xb0] sm:$0xff]  ;;  %v1428_v11 = vld [vmem:[%s2348_s1 + $0xa8] sm:$0xff]  ;;  %vm1307_vm9 = vcmask 1043456   ;;  %vm1403_vm10 = vcmask 253952  }
  0x50   :  { %224 = vmatprep.subr.mxu0 %v1436_v3  ;;  %v1427_v12 = vld [vmem:[%s2348_s1 + $0xa0] sm:$0xff]  ;;  %v1426_v13 = vld [vmem:[%s2348_s1 + $0x98] sm:$0xff]  ;;  %v1425_v14 = vld [vmem:[%s2348_s1 + $0x90] sm:$0xff]  ;;  %vm139_vm1 = vcmp.lt.s32.totalorder %v2004_v28, 1  ;;  %vm131_vm2 = vcmp.gt.s32.totalorder %v2004_v28, 0  ;;  %vm156_vm3 = vcmp.lt.s32.totalorder %v2004_v28, 7 }
  0x51   :  { %225 = vmatpush1.msra.mxu0 %v1435_v4  ;;  %v1424_v15 = vld [vmem:[%s2348_s1 + $0x88] sm:$0xff]  ;;  %v1423_v16 = vld [vmem:[%s2348_s1 + $0x80] sm:$0xff]  ;;  %v310_v18 = vld [vmem:[%s2348_s1 + $0x78] sm:$0xff] }
  0x52   :  { %226 = vmatprep.subr.mxu0 %v1434_v5  ;;  %v1974_v17 = vld [vmem:[#allocation2] sm:$0xff]  ;;  %v309_v19 = vld [vmem:[%s2348_s1 + $0x70] sm:$0xff]  ;;  %v308_v20 = vld [vmem:[%s2348_s1 + $0x68] sm:$0xff] }
  0x53   :  { %227 = vmatpush1.msra.mxu0 %v1433_v6  ;;  %v307_v22 = vld [vmem:[%s2348_s1 + $0x60] sm:$0xff]  ;;  %v1991_v23 = vld [vmem:[#allocation2 + $0x8] sm:$0xff]  ;;  %v306_v24 = vld [vmem:[%s2348_s1 + $0x58] sm:$0xff]  ;;  %v135_v32 = vrot.slane %v1974_v17, 7  ;;  %v152_v59 = vrot.slane %v1974_v17, 1 }
  0x54   :  { %228 = vmatprep.subr.mxu0 %v1432_v7  ;;  %v305_v25 = vld [vmem:[%s2348_s1 + $0x50] sm:$0xff]  ;;  %v304_v26 = vld [vmem:[%s2348_s1 + $0x48] sm:$0xff]  ;;  %v2002_v27 = vld [vmem:[#allocation2 + $0x18] sm:$0xff]  ;;  %v136_v42 = vrot.slane %v1991_v23, 7  ;;  %v153_v60 = vrot.slane %v1991_v23, 1  ;;  %v130_v7 = vadd.s32 24, %v2004_v28 }
  0x55   :  { %229 = vmatpush1.msra.mxu0 %v1431_v8  ;;  %v303_v29 = vld [vmem:[%s2348_s1 + $0x40] sm:$0xff]  ;;  %v2012_v30 = vld [vmem:[#allocation2 + $0x10] sm:$0xff]  ;;  %v302_v31 = vld [vmem:[%s2348_s1 + $0x38] sm:$0xff]  ;;  %v138_v34 = vrot.slane %v2002_v27, 7  ;;  %v155_v5 = vrot.slane %v2002_v27, 1 }
  0x56   :  { %230 = vmatprep.subr.mxu0 %v1430_v9  ;;  %v301_v33 = vld [vmem:[%s2348_s1 + $0x30] sm:$0xff]  ;;  %v300_v35 = vld [vmem:[%s2348_s1 + $0x28] sm:$0xff]  ;;  %v299_v36 = vld [vmem:[%s2348_s1 + $0x20] sm:$0xff]  ;;  %v137_v48 = vrot.slane %v2012_v30, 7  ;;  %v142_v49 = vsel %vm139_vm1, %v135_v32, %v136_v42  ;;  %v154_v3 = vrot.slane %v2012_v30, 1  ;;  %v159_v4 = vsel %vm156_vm3, %v152_v59, %v153_v60 }
  0x57   :  { %231 = vmatpush1.msra.mxu0 %v1429_v10  ;;  %v298_v37 = vld [vmem:[%s2348_s1 + $0x18] sm:$0xff]  ;;  %v297_v38 = vld [vmem:[%s2348_s1 + $0x10] sm:$0xff]  ;;  %v143_v39 = vsel %vm139_vm1, %v138_v34, %v135_v32  ;;  %v296_v40 = vld [vmem:[%s2348_s1 + $0x8] sm:$0xff]  ;;  %vm151_vm4 = vcmp.lt.s32.totalorder %v130_v7, 31  ;;  %v160_v9 = vsel %vm156_vm3, %v155_v5, %v152_v59 }
  0x58   :  { %232 = vmatprep.subr.mxu0 %v1428_v11  ;;  %v295_v41 = vld [vmem:[%s2348_s1] sm:$0xff]  ;;  %v144_v43 = vsel %vm131_vm2, %v143_v39, 0.0  ;;  %v1462_v44 = vld [vmem:[%s2348_s1 + $0x178] sm:$0xff]  ;;  %v1461_v45 = vld [vmem:[%s2348_s1 + $0x170] sm:$0xff]  ;;  %v141_v54 = vsel %vm139_vm1, %v136_v42, %v137_v48  ;;  %v140_v61 = vsel %vm139_vm1, %v137_v48, %v138_v34  ;;  %v158_v6 = vsel %vm156_vm3, %v153_v60, %v154_v3 }
  0x59   :  { %233 = vmatpush1.msra.mxu0 %v1427_v12  ;;  %v1460_v46 = vld [vmem:[%s2348_s1 + $0x168] sm:$0xff]  ;;  %v1459_v47 = vld [vmem:[%s2348_s1 + $0x160] sm:$0xff]  ;;  %v1458_v50 = vld [vmem:[%s2348_s1 + $0x158] sm:$0xff]  ;;  %v157_v8 = vsel %vm156_vm3, %v154_v3, %v155_v5  ;;  %v164_v10 = vsel %vm151_vm4, %v160_v9, 0.0 }
  0x5a   :  { %234 = vmatprep.subr.mxu0 %v1426_v13  ;;  %v1457_v51 = vld [vmem:[%s2348_s1 + $0x150] sm:$0xff]  ;;  %v1456_v52 = vld [vmem:[%s2348_s1 + $0x148] sm:$0xff]  ;;  %v1455_v53 = vld [vmem:[%s2348_s1 + $0x140] sm:$0xff] }
  0x5b   :  { %235 = vmatpush1.msra.mxu0 %v1425_v14  ;;  %v1454_v55 = vld [vmem:[%s2348_s1 + $0x138] sm:$0xff]  ;;  %v1453_v56 = vld [vmem:[%s2348_s1 + $0x130] sm:$0xff]  ;;  %v1452_v57 = vld [vmem:[%s2348_s1 + $0x128] sm:$0xff] }
  0x5c   :  { %236 = vmatprep.subr.mxu0 %v1424_v15  ;;  %v1451_v58 = vld [vmem:[%s2348_s1 + $0x120] sm:$0xff]  ;;  %v1450_v62 = vld [vmem:[%s2348_s1 + $0x118] sm:$0xff]  ;;  %v1449_v63 = vld [vmem:[%s2348_s1 + $0x110] sm:$0xff] }
  0x5d   :  { %237 = vmatpush1.msra.mxu0 %v1423_v16  ;;  %v1448_v1 = vld [vmem:[%s2348_s1 + $0x108] sm:$0xff]  ;;  %v1447_v2 = vld [vmem:[%s2348_s1 + $0x100] sm:$0xff]  ;;  %v696_v12 = vld [vmem:[#allocation8 + $0xf0] sm:$0xff] }
  0x5e   :  { %1439 = vmatmul.mubr.msk.f32.vlgmr.msra.gmra.mxu0 %vm193_vm0, %v1974_v17  ;;  %339 = vmatprep.subr.mxu0 %v310_v18  ;;  %v697_v11 = vld [vmem:[#allocation8 + $0xf8] sm:$0xff]  ;;  %v695_v13 = vld [vmem:[#allocation8 + $0xe8] sm:$0xff]  ;;  %v694_v14 = vld [vmem:[#allocation8 + $0xe0] sm:$0xff] }
  0x5f   :  { %340 = vmatpush1.msra.mxu0 %v309_v19  ;;  %276 = vmatprep.mubr.f32.mxu0 %v1831_v0  ;;  %v693_v15 = vld [vmem:[#allocation8 + $0xd8] sm:$0xff]  ;;  %v692_v16 = vld [vmem:[#allocation8 + $0xd0] sm:$0xff]  ;;  %v691_v17 = vld [vmem:[#allocation8 + $0xc8] sm:$0xff] }
  0x60   :  { %341 = vmatprep.subr.mxu0 %v308_v20  ;;  %v690_v18 = vld [vmem:[#allocation8 + $0xc0] sm:$0xff]  ;;  %v689_v19 = vld [vmem:[#allocation8 + $0xb8] sm:$0xff]  ;;  %v688_v20 = vld [vmem:[#allocation8 + $0xb0] sm:$0xff] }
  0x61   :  { %342 = vmatpush1.msra.mxu0 %v307_v22  ;;  %v687_v21 = vld [vmem:[#allocation8 + $0xa8] sm:$0xff]  ;;  %v686_v22 = vld [vmem:[#allocation8 + $0xa0] sm:$0xff]  ;;  %v677_v32 = vld [vmem:[#allocation8 + $0x58] sm:$0xff] }
  0x62   :  { %1440 = vmatmul.mubr.msk.f32.gmra.mxu0 %vm193_vm0, %v1991_v23  ;;  %343 = vmatprep.subr.mxu0 %v306_v24  ;;  %v685_v23 = vld [vmem:[#allocation8 + $0x98] sm:$0xff]  ;;  %v684_v24 = vld [vmem:[#allocation8 + $0x90] sm:$0xff]  ;;  %v675_v34 = vld [vmem:[#allocation8 + $0x48] sm:$0xff] }
  0x63   :  { %344 = vmatpush1.msra.mxu0 %v305_v25  ;;  %282 = vmatprep.mubr.f32.mxu0 %v1831_v0  ;;  %v683_v25 = vld [vmem:[#allocation8 + $0x88] sm:$0xff]  ;;  %v670_v39 = vld [vmem:[#allocation8 + $0x20] sm:$0xff]  ;;  %v725_v48 = vld [vmem:[#allocation8 + $0x1d8] sm:$0xff] }
  0x64   :  { %345 = vmatprep.subr.mxu0 %v304_v26  ;;  %v682_v26 = vld [vmem:[#allocation8 + $0x80] sm:$0xff]  ;;  %v667_v42 = vld [vmem:[#allocation8 + $0x8] sm:$0xff] }
  0x65   :  { %346 = vmatpush1.msra.mxu0 %v303_v29  ;;  %v680_v29 = vld [vmem:[#allocation8 + $0x70] sm:$0xff] }
  0x66   :  { %1441 = vmatmul.mubr.msk.f32.gmra.mxu0 %vm193_vm0, %v2012_v30  ;;  %347 = vmatprep.subr.mxu0 %v302_v31  ;;  %v679_v30 = vld [vmem:[#allocation8 + $0x68] sm:$0xff]  ;;  %v678_v31 = vld [vmem:[#allocation8 + $0x60] sm:$0xff] }
  0x67   :  { %348 = vmatpush1.msra.mxu0 %v301_v33  ;;  %288 = vmatprep.mubr.f32.mxu0 %v1831_v0  ;;  %v676_v33 = vld [vmem:[#allocation8 + $0x50] sm:$0xff] }
  0x68   :  { %349 = vmatprep.subr.mxu0 %v300_v35  ;;  %v674_v35 = vld [vmem:[#allocation8 + $0x40] sm:$0xff] }
  0x69   :  { %350 = vmatpush1.msra.mxu0 %v299_v36  ;;  %v673_v36 = vld [vmem:[#allocation8 + $0x38] sm:$0xff] }
  0x6a   :  { %1442 = vmatmul.mubr.msk.f32.gmra.mxu0 %vm193_vm0, %v2002_v27  ;;  %351 = vmatprep.subr.mxu0 %v298_v37  ;;  %v681_v27 = vld [vmem:[#allocation8 + $0x78] sm:$0xff]  ;;  %v672_v37 = vld [vmem:[#allocation8 + $0x30] sm:$0xff] }
  0x6b   :  { %352 = vmatpush1.msra.mxu0 %v297_v38  ;;  %387 = vmatprep.mubr.f32.mxu0 %v1831_v0  ;;  %v671_v38 = vld [vmem:[#allocation8 + $0x28] sm:$0xff] }
  0x6c   :  { %353 = vmatprep.subr.mxu0 %v296_v40  ;;  %v669_v40 = vld [vmem:[#allocation8 + $0x18] sm:$0xff] }
  0x6d   :  { %354 = vmatpush1.msra.mxu0 %v295_v41  ;;  %v668_v41 = vld [vmem:[#allocation8 + $0x10] sm:$0xff] }
  0x6e   :  { %1443 = vmatmul.mubr.msk.f32.vlgmr.msra.gmra.mxu0 %vm193_vm0, %v144_v43  ;;  %465 = vmatprep.subr.mxu0 %v1462_v44  ;;  %v666_v43 = vld [vmem:[#allocation8] sm:$0xff]  ;;  %v729_v44 = vld [vmem:[#allocation8 + $0x1f8] sm:$0xff] }
  0x6f   :  { %466 = vmatpush1.msra.mxu0 %v1461_v45  ;;  %393 = vmatprep.mubr.f32.mxu0 %v1831_v0  ;;  %v728_v45 = vld [vmem:[#allocation8 + $0x1f0] sm:$0xff] }
  0x70   :  { %467 = vmatprep.subr.mxu0 %v1460_v46  ;;  %v727_v46 = vld [vmem:[#allocation8 + $0x1e8] sm:$0xff] }
  0x71   :  { %468 = vmatpush1.msra.mxu0 %v1459_v47  ;;  %v726_v47 = vld [vmem:[#allocation8 + $0x1e0] sm:$0xff] }
  0x72   :  { %1444 = vmatmul.mubr.msk.f32.gmra.mxu0 %vm193_vm0, %v142_v49  ;;  %469 = vmatprep.subr.mxu0 %v1458_v50  ;;  %v724_v49 = vld [vmem:[#allocation8 + $0x1d0] sm:$0xff]  ;;  %v723_v50 = vld [vmem:[#allocation8 + $0x1c8] sm:$0xff] }
  0x73   :  { %470 = vmatpush1.msra.mxu0 %v1457_v51  ;;  %399 = vmatprep.mubr.f32.mxu0 %v1831_v0  ;;  %v722_v51 = vld [vmem:[#allocation8 + $0x1c0] sm:$0xff] }
  0x74   :  { %471 = vmatprep.subr.mxu0 %v1456_v52  ;;  %v721_v52 = vld [vmem:[#allocation8 + $0x1b8] sm:$0xff] }
  0x75   :  { %472 = vmatpush1.msra.mxu0 %v1455_v53  ;;  %v720_v53 = vld [vmem:[#allocation8 + $0x1b0] sm:$0xff] }
  0x76   :  { %1445 = vmatmul.mubr.msk.f32.gmra.mxu0 %vm193_vm0, %v141_v54  ;;  %473 = vmatprep.subr.mxu0 %v1454_v55  ;;  %v719_v54 = vld [vmem:[#allocation8 + $0x1a8] sm:$0xff]  ;;  %v718_v55 = vld [vmem:[#allocation8 + $0x1a0] sm:$0xff] }
  0x77   :  { %474 = vmatpush1.msra.mxu0 %v1453_v56  ;;  %405 = vmatprep.mubr.f32.mxu0 %v1831_v0  ;;  %v717_v56 = vld [vmem:[#allocation8 + $0x198] sm:$0xff] }
  0x78   :  { %475 = vmatprep.subr.mxu0 %v1452_v57  ;;  %v716_v57 = vld [vmem:[#allocation8 + $0x190] sm:$0xff] }
  0x79   :  { %476 = vmatpush1.msra.mxu0 %v1451_v58 }
  0x7a   :  { %1446 = vmatmul.mubr.msk.f32.gmra.mxu0 %vm193_vm0, %v140_v61  ;;  %477 = vmatprep.subr.mxu0 %v1450_v62 }
  0x7b   :  { %478 = vmatpush1.msra.mxu0 %v1449_v63  ;;  %513 = vmatprep.mubr.f32.mxu0 %v1831_v0 }
  0x7c   :  { %479 = vmatprep.subr.mxu0 %v1448_v1 }
  0x7d   :  { %480 = vmatpush1.msra.mxu0 %v1447_v2 }
  0x7e   :  { %1463 = vmatmul.mubr.msk.f32.vlgmr.msra.gmra.mxu0 %vm193_vm0, %v159_v4  ;;  %730 = vmatprep.subr.mxu0 %v697_v11 }
  0x7f   :  { %519 = vmatprep.mubr.f32.mxu0 %v1831_v0  ;;  %731 = vmatpush1.msra.mxu0 %v696_v12 }
  0x80   :  { %732 = vmatprep.subr.mxu0 %v695_v13  ;;  %v185_v13 = vsub.s32 0, %v2004_v28 }
  0x81   :  { %733 = vmatpush1.msra.mxu0 %v694_v14 }
  0x82   :  { %1464 = vmatmul.mubr.msk.f32.gmra.mxu0 %vm193_vm0, %v158_v6  ;;  %734 = vmatprep.subr.mxu0 %v693_v15  ;;  %v125_v15 = vld [vmem:[#allocation5] sm:$0x3] }
  0x83   :  { %525 = vmatprep.mubr.f32.mxu0 %v1831_v0  ;;  %735 = vmatpush1.msra.mxu0 %v692_v16  ;;  %v189_v16 = vsub.s32 1, %v2004_v28  ;;  %v1071_v28 = vld [vmem:[%s2354_s7] sm:$0xff] }
  0x84   :  { %736 = vmatprep.subr.mxu0 %v691_v17 }
  0x85   :  { %737 = vmatpush1.msra.mxu0 %v690_v18  ;;  %v186_v18 = vrot.slane %v125_v15, %v185_v13  ;;  %v700_v13 = vld [vmem:[#allocation8 + $0x110] sm:$0xff] }
  0x86   :  { %1465 = vmatmul.mubr.msk.f32.gmra.mxu0 %vm193_vm0, %v157_v8  ;;  %738 = vmatprep.subr.mxu0 %v689_v19 }
  0x87   :  { %531 = vmatprep.mubr.f32.mxu0 %v1831_v0  ;;  %739 = vmatpush1.msra.mxu0 %v688_v20  ;;  %v190_v20 = vrot.slane %v125_v15, %v189_v16  ;;  %v698_v15 = vld [vmem:[#allocation8 + $0x100] sm:$0xff] }
  0x88   :  { %740 = vmatprep.subr.mxu0 %v687_v21 }
  0x89   :  { %741 = vmatpush1.msra.mxu0 %v686_v22 }
  0x8a   :  { %1466 = vmatmul.mubr.msk.f32.gmra.mxu0 %vm193_vm0, %v164_v10  ;;  %742 = vmatprep.subr.mxu0 %v685_v23 }
  0x8b   :  { %743 = vmatpush1.msra.mxu0 %v684_v24 }
  0x8c   :  { %744 = vmatprep.subr.mxu0 %v683_v25 }
  0x8d   :  { %745 = vmatpush1.msra.mxu0 %v682_v26 }
  0x8e   :  { %746 = vmatprep.subr.mxu0 %v681_v27 }
  0x8f   :  { %747 = vmatpush1.msra.mxu0 %v680_v29 }
  0x90   :  { %748 = vmatprep.subr.mxu0 %v679_v30 }
  0x91   :  { %749 = vmatpush1.msra.mxu0 %v678_v31 }
  0x92   :  { %750 = vmatprep.subr.mxu0 %v677_v32 }
  0x93   :  { %751 = vmatpush1.msra.mxu0 %v676_v33 }
  0x94   :  { %752 = vmatprep.subr.mxu0 %v675_v34 }
  0x95   :  { %753 = vmatpush1.msra.mxu0 %v674_v35 }
  0x96   :  { %754 = vmatprep.subr.mxu0 %v673_v36 }
  0x97   :  { %755 = vmatpush1.msra.mxu0 %v672_v37 }
  0x98   :  { %756 = vmatprep.subr.mxu0 %v671_v38 }
  0x99   :  { %757 = vmatpush1.msra.mxu0 %v670_v39 }
  0x9a   :  { %758 = vmatprep.subr.mxu0 %v669_v40 }
  0x9b   :  { %759 = vmatpush1.msra.mxu0 %v668_v41 }
  0x9c   :  { %760 = vmatprep.subr.mxu0 %v667_v42 }
  0x9d   :  { %761 = vmatpush1.msra.mxu0 %v666_v43 }
  0x9e   :  { %762 = vmatprep.subr.mxu0 %v729_v44 }
  0x9f   :  { %763 = vmatpush2.msra.mxu0 %v728_v45 }
  0xa0   :  { %764 = vmatprep.subr.mxu0 %v727_v46 }
  0xa1   :  { %765 = vmatpush2.msra.mxu0 %v726_v47 }
  0xa2   :  { %766 = vmatprep.subr.mxu0 %v725_v48 }
  0xa3   :  { %767 = vmatpush2.msra.mxu0 %v724_v49 }
  0xa4   :  { %768 = vmatprep.subr.mxu0 %v723_v50 }
  0xa5   :  { %769 = vmatpush2.msra.mxu0 %v722_v51 }
  0xa6   :  { %770 = vmatprep.subr.mxu0 %v721_v52 }
  0xa7   :  { %771 = vmatpush2.msra.mxu0 %v720_v53 }
  0xa8   :  { %772 = vmatprep.subr.mxu0 %v719_v54 }
  0xa9   :  { %773 = vmatpush2.msra.mxu0 %v718_v55 }
  0xaa   :  { %774 = vmatprep.subr.mxu0 %v717_v56 }
  0xab   :  { %775 = vmatpush2.msra.mxu0 %v716_v57  ;;  %v554_v57 = vld [vmem:[#allocation7] sm:$0xff] }
 0x11e   :  { %v272_v58 = vpop.f32.mrf.mxu0 }
 0x11f   :  { %v273_v40 = vadd.f32 %v272_v58, %v186_v18  ;;  %v555_v58 = vld [vmem:[#allocation7 + $0x8] sm:$0xff] }
 0x120   :  { %v274_v59 = vpop.f32.mrf.mxu0 }
 0x121   :  { %v275_v36 = vadd.f32 %v274_v59, %v190_v20  ;;  %v556_v59 = vld [vmem:[#allocation7 + $0x10] sm:$0xff] }
 0x122   :  { %v278_v60 = vpop.f32.mrf.mxu0 }
 0x123   :  { %v279_v32 = vadd.f32 %v278_v60, %v186_v18  ;;  %v557_v60 = vld [vmem:[#allocation7 + $0x18] sm:$0xff] }
 0x124   :  { %v280_v61 = vpop.f32.mrf.mxu0 }
 0x125   :  { %v281_v29 = vadd.f32 %v280_v61, %v190_v20  ;;  %v715_v61 = vld [vmem:[#allocation8 + $0x188] sm:$0xff] }
 0x126   :  { %v284_v62 = vpop.f32.mrf.mxu0  ;;  %776 = vmatprep.subr.mxu0 %v715_v61  ;;  %v1484_v61 = vld [vmem:[%s2352_s5 + $0x90] sm:$0xff] }
 0x127   :  { %v285_v25 = vadd.f32 %v284_v62, %v186_v18  ;;  %v714_v62 = vld [vmem:[#allocation8 + $0x180] sm:$0xff] }
 0x128   :  { %v286_v63 = vpop.f32.mrf.mxu0  ;;  %777 = vmatpush2.msra.mxu0 %v714_v62  ;;  %v1483_v62 = vld [vmem:[%s2352_s5 + $0x88] sm:$0xff] }
 0x129   :  { %v287_v23 = vadd.f32 %v286_v63, %v190_v20  ;;  %v713_v63 = vld [vmem:[#allocation8 + $0x178] sm:$0xff] }
 0x12a   :  { %v290_v1 = vpop.f32.mrf.mxu0  ;;  %778 = vmatprep.subr.mxu0 %v713_v63 }
 0x12b   :  { %v291_v21 = vadd.f32 %v290_v1, %v186_v18  ;;  %v712_v1 = vld [vmem:[#allocation8 + $0x170] sm:$0xff] }
 0x12c   :  { %v292_v2 = vpop.f32.mrf.mxu0  ;;  %779 = vmatpush2.msra.mxu0 %v712_v1  ;;  %v1482_v1 = vld [vmem:[%s2352_s5 + $0x80] sm:$0xff] }
 0x12d   :  { %v293_v24 = vadd.f32 %v292_v2, %v190_v20  ;;  %v711_v2 = vld [vmem:[#allocation8 + $0x168] sm:$0xff] }
 0x12e   :  { %v389_v3 = vpop.f32.mrf.mxu0  ;;  %780 = vmatprep.subr.mxu0 %v711_v2 }
 0x12f   :  { %v412_v46 = vadd.f32 %v389_v3, %v273_v40  ;;  %v710_v3 = vld [vmem:[#allocation8 + $0x160] sm:$0xff] }
 0x130   :  { %v391_v4 = vpop.f32.mrf.mxu0  ;;  %781 = vmatpush2.msra.mxu0 %v710_v3 }
 0x131   :  { %v413_v43 = vadd.f32 %v391_v4, %v275_v36  ;;  %v709_v4 = vld [vmem:[#allocation8 + $0x158] sm:$0xff]  ;;  %v1473_v36 = vld [vmem:[%s2352_s5 + $0x50] sm:$0xff] }
 0x132   :  { %v395_v5 = vpop.f32.mrf.mxu0  ;;  %782 = vmatprep.subr.mxu0 %v709_v4 }
 0x133   :  { %v414_v41 = vadd.f32 %v395_v5, %v279_v32  ;;  %v708_v5 = vld [vmem:[#allocation8 + $0x150] sm:$0xff] }
 0x134   :  { %v397_v6 = vpop.f32.mrf.mxu0  ;;  %783 = vmatpush2.msra.mxu0 %v708_v5  ;;  %v1477_v32 = vld [vmem:[%s2352_s5 + $0x70] sm:$0xff] }
 0x135   :  { %v415_v37 = vadd.f32 %v397_v6, %v281_v29  ;;  %v707_v6 = vld [vmem:[#allocation8 + $0x148] sm:$0xff] }
 0x136   :  { %v401_v7 = vpop.f32.mrf.mxu0  ;;  %784 = vmatprep.subr.mxu0 %v707_v6 }
 0x137   :  { %v416_v33 = vadd.f32 %v401_v7, %v285_v25  ;;  %v706_v7 = vld [vmem:[#allocation8 + $0x140] sm:$0xff] }
 0x138   :  { %v403_v8 = vpop.f32.mrf.mxu0  ;;  %785 = vmatpush2.msra.mxu0 %v706_v7  ;;  %v1479_v7 = vld [vmem:[#allocation10] ss:$0 sm:$0xff] }
 0x139   :  { %v417_v30 = vadd.f32 %v403_v8, %v287_v23  ;;  %v705_v8 = vld [vmem:[#allocation8 + $0x138] sm:$0xff] }
 0x13a   :  { %v407_v9 = vpop.f32.mrf.mxu0  ;;  %786 = vmatprep.subr.mxu0 %v705_v8 }
 0x13b   :  { %v418_v26 = vadd.f32 %v407_v9, %v291_v21  ;;  %v704_v9 = vld [vmem:[#allocation8 + $0x130] sm:$0xff] }
 0x13c   :  { %v409_v10 = vpop.f32.mrf.mxu0  ;;  %787 = vmatpush2.msra.mxu0 %v704_v9 }
 0x13d   :  { %v419_v31 = vadd.f32 %v409_v10, %v293_v24  ;;  %v703_v10 = vld [vmem:[#allocation8 + $0x128] sm:$0xff] }
 0x13e   :  { %v515_v11 = vpop.f32.mrf.mxu0  ;;  %788 = vmatprep.subr.mxu0 %v703_v10 }
 0x13f   :  { %v538_v51 = vadd.f32 %v515_v11, %v412_v46  ;;  %v702_v11 = vld [vmem:[#allocation8 + $0x120] sm:$0xff]  ;;  %v912_v46 = vld [vmem:[%s2352_s5 + $0x38] sm:$0xff] }
 0x140   :  { %v517_v12 = vpop.f32.mrf.mxu0  ;;  %789 = vmatpush2.msra.mxu0 %v702_v11 }
 0x141   :  { %v539_v49 = vadd.f32 %v517_v12, %v413_v43  ;;  %v546_v56 = vmax.f32 %v538_v51, 0.0  ;;  %v701_v12 = vld [vmem:[#allocation8 + $0x118] sm:$0xff]  ;;  %v907_v51 = vld [vmem:[%s2352_s5 + $0x10] sm:$0xff] }
 0x142   :  { %v521_v14 = vpop.f32.mrf.mxu0  ;;  %790 = vmatprep.subr.mxu0 %v701_v12 }
 0x143   :  { %v540_v47 = vadd.f32 %v521_v14, %v414_v41  ;;  %v547_v55 = vmax.f32 %v539_v49, 0.0  ;;  %791 = vmatpush2.msra.mxu0 %v700_v13  ;;  %v699_v14 = vld [vmem:[#allocation8 + $0x108] sm:$0xff]  ;;  %v909_v49 = vld [vmem:[%s2352_s5 + $0x20] sm:$0xff] }
 0x144   :  { %v523_v17 = vpop.f32.mrf.mxu0  ;;  %792 = vmatprep.subr.mxu0 %v699_v14  ;;  %v1151_v14 = vld [vmem:[%s2355_s8 + $0x8] sm:$0xff] }
 0x145   :  { %v541_v44 = vadd.f32 %v523_v17, %v415_v37  ;;  %v548_v54 = vmax.f32 %v540_v47, 0.0  ;;  %793 = vmatpush2.msra.mxu0 %v698_v15  ;;  %v1472_v37 = vld [vmem:[%s2352_s5 + $0x48] sm:$0xff]  ;;  %v911_v47 = vld [vmem:[%s2352_s5 + $0x30] sm:$0xff]  ;;  %v1150_v15 = vld [vmem:[%s2355_s8] sm:$0xff]  ;;  %s1834_s8 = smov 120  }
 0x146   :  { %v527_v19 = vpop.f32.mrf.mxu0 }
 0x147   :  { %v542_v42 = vadd.f32 %v527_v19, %v416_v33  ;;  %v549_v53 = vmax.f32 %v541_v44, 0.0  ;;  %v1476_v33 = vld [vmem:[%s2352_s5 + $0x68] sm:$0xff] }
 0x148   :  { %v529_v22 = vpop.f32.mrf.mxu0 }
 0x149   :  { %v543_v38 = vadd.f32 %v529_v22, %v417_v30  ;;  %v550_v52 = vmax.f32 %v542_v42, 0.0 }
 0x14a   :  { %v533_v27 = vpop.f32.mrf.mxu0 }
 0x14b   :  { %v544_v34 = vadd.f32 %v533_v27, %v418_v26  ;;  %v551_v50 = vmax.f32 %v543_v38, 0.0  ;;  %v1471_v38 = vld [vmem:[%s2352_s5 + $0x40] sm:$0xff] }
 0x14c   :  { %v535_v35 = vpop.f32.mrf.mxu0 }
 0x14d   :  { %v545_v39 = vadd.f32 %v535_v35, %v419_v31  ;;  %v552_v48 = vmax.f32 %v544_v34, 0.0  ;;  %v1478_v31 = vld [vmem:[%s2352_s5 + $0x78] sm:$0xff]  ;;  %v1475_v34 = vld [vmem:[%s2352_s5 + $0x60] sm:$0xff] }
 0x14e   :  { %v1474_v35 = vld [vmem:[%s2352_s5 + $0x58] sm:$0xff] }
 0x14f   :  { %v553_v45 = vmax.f32 %v545_v39, 0.0 }
 0x151   :  { %595 = vmatprep.subr.mxu1 %v553_v45 }
 0x152   :  { %596 = vmatpush1.msra.mxu1 %v552_v48  ;;  %v910_v48 = vld [vmem:[%s2352_s5 + $0x28] sm:$0xff] }
 0x153   :  { %597 = vmatprep.subr.mxu1 %v551_v50  ;;  %v908_v50 = vld [vmem:[%s2352_s5 + $0x18] sm:$0xff] }
 0x154   :  { %598 = vmatpush1.msra.mxu1 %v550_v52  ;;  %v906_v52 = vld [vmem:[%s2352_s5 + $0x8] sm:$0xff] }
 0x155   :  { %599 = vmatprep.subr.mxu1 %v549_v53 }
 0x156   :  { %600 = vmatpush1.msra.mxu1 %v548_v54  ;;  %v905_v54 = vld [vmem:[%s2352_s5] sm:$0xff] }
 0x157   :  { %601 = vmatprep.subr.mxu1 %v547_v55  ;;  %v1489_v55 = vld [vmem:[%s2352_s5 + $0xb8] sm:$0xff] }
 0x158   :  { %602 = vmatpush1.msra.mxu1 %v546_v56 }
 0x159   :  { %1467 = vmatmul.mubr.msk.f32.vlgmr.msra.gmra.mxu1 %vm558_vm5, %v554_v57  ;;  %1545 = vmatprep.subr.mxu1 %v1831_v0  ;;  %v1488_v57 = vld [vmem:[%s2352_s5 + $0xb0] sm:$0xff] }
 0x15a   :  { %641 = vmatprep.mubr.f32.mxu1 %v1831_v0  ;;  %1546 = vmatpush3.msra.mxu1 %v1478_v31  ;;  %v1325_v31 = vld [vmem:[%s2358_s11 + $0x50] sm:$0xff] }
 0x15b   :  { %1547 = vmatprep.subr.mxu1 %v1831_v0 }
 0x15c   :  { %1548 = vmatpush3.msra.mxu1 %v1477_v32  ;;  %v1324_v32 = vld [vmem:[%s2358_s11 + $0x48] sm:$0xff] }
 0x15d   :  { %1468 = vmatmul.mubr.msk.f32.gmra.mxu1 %vm558_vm5, %v555_v58  ;;  %1549 = vmatprep.subr.mxu1 %v1831_v0  ;;  %v1487_v58 = vld [vmem:[%s2352_s5 + $0xa8] sm:$0xff] }
 0x15e   :  { %647 = vmatprep.mubr.f32.mxu1 %v1831_v0  ;;  %1550 = vmatpush3.msra.mxu1 %v1476_v33  ;;  %v1323_v33 = vld [vmem:[%s2358_s11 + $0x40] sm:$0xff] }
 0x15f   :  { %1551 = vmatprep.subr.mxu1 %v1831_v0 }
 0x160   :  { %1552 = vmatpush3.msra.mxu1 %v1475_v34  ;;  %v1322_v34 = vld [vmem:[%s2358_s11 + $0x38] sm:$0xff] }
 0x161   :  { %1469 = vmatmul.mubr.msk.f32.gmra.mxu1 %vm558_vm5, %v556_v59  ;;  %1553 = vmatprep.subr.mxu1 %v1831_v0  ;;  %v1486_v59 = vld [vmem:[%s2352_s5 + $0xa0] sm:$0xff] }
 0x162   :  { %653 = vmatprep.mubr.f32.mxu1 %v1831_v0  ;;  %1554 = vmatpush3.msra.mxu1 %v1474_v35  ;;  %v1321_v35 = vld [vmem:[%s2358_s11 + $0x30] sm:$0xff] }
 0x163   :  { %1555 = vmatprep.subr.mxu1 %v1831_v0 }
 0x164   :  { %1556 = vmatpush3.msra.mxu1 %v1473_v36  ;;  %v1320_v36 = vld [vmem:[%s2358_s11 + $0x28] sm:$0xff] }
 0x165   :  { %1470 = vmatmul.mubr.msk.f32.gmra.mxu1 %vm558_vm5, %v557_v60  ;;  %1557 = vmatprep.subr.mxu1 %v1831_v0  ;;  %v1485_v60 = vld [vmem:[%s2352_s5 + $0x98] sm:$0xff] }
 0x166   :  { %1558 = vmatpush3.msra.mxu1 %v1472_v37  ;;  %1561 = vmatprep.mubr.msk.f32.mxu1 %vm1832_vm6, %v1831_v0  ;;  %v1319_v37 = vld [vmem:[%s2358_s11 + $0x20] sm:$0xff] }
 0x167   :  { %1559 = vmatprep.subr.mxu1 %v1831_v0 }
 0x168   :  { %1560 = vmatpush3.msra.mxu1 %v1471_v38  ;;  %v1318_v38 = vld [vmem:[%s2358_s11 + $0x18] sm:$0xff] }
 0x169   :  { %1564 = vmatprep.subr.mxu1 %v1831_v0 }
 0x219   :  { %v637_v16 = vpop.f32.mrf.mxu1 }
 0x21b   :  { %v639_v17 = vpop.f32.mrf.mxu1 }
 0x21d   :  { %v643_v18 = vpop.f32.mrf.mxu1 }
 0x21e   :  { %v660_v23 = vmax.f32 %v637_v16, %v643_v18 }
 0x21f   :  { %v645_v19 = vpop.f32.mrf.mxu1 }
 0x220   :  { %v661_v22 = vmax.f32 %v639_v17, %v645_v19 }
 0x221   :  { %v649_v20 = vpop.f32.mrf.mxu1 }
 0x222   :  { %v662_v26 = vmax.f32 %v660_v23, %v649_v20  ;;  %v1231_v20 = vld [vmem:[%s2356_s9] sm:$0xff] }
 0x223   :  { %v651_v21 = vpop.f32.mrf.mxu1 }
 0x224   :  { %v663_v25 = vmax.f32 %v661_v22, %v651_v21 }
 0x225   :  { %v655_v24 = vpop.f32.mrf.mxu1 }
 0x226   :  { %v664_v30 = vmax.f32 %v662_v26, %v655_v24  ;;  %v1329_v26 = vld [vmem:[%s2358_s11 + $0x70] sm:$0xff] }
 0x227   :  { %v657_v27 = vpop.f32.mrf.mxu1 }
 0x228   :  { %v665_v29 = vmax.f32 %v663_v25, %v657_v27  ;;  %v1330_v25 = vld [vmem:[%s2358_s11 + $0x78] sm:$0xff]  ;;  %v1328_v27 = vld [vmem:[%s2358_s11 + $0x68] sm:$0xff] }
 0x22a   :  { %794 = vmatprep.mubr.f32.mxu0 %v665_v29  ;;  %v1327_v29 = vld [vmem:[%s2358_s11 + $0x60] sm:$0xff] }
 0x22b   :  { %795 = vmatmul.mubr.f32.vlgmr.msra.gmra.mxu0 %v664_v30  ;;  %v1326_v30 = vld [vmem:[%s2358_s11 + $0x58] sm:$0xff] }
 0x2eb   :  { %v796_v39 = vpop.f32.mrf.mxu0 }
 0x2ec   :  { %802 = vrot.lane.b32.xlu0 %v796_v39, %s1833_s19 }
 0x2ed   :  { %v798_v40 = vpop.f32.mrf.mxu0 }
 0x2f0   :  { %808 = vrot.lane.b32.xlu0 %v798_v40, %s1833_s19 }
 0x35e   :  { %v803_v41 = vpop.permute.xlu0 %802 }
 0x35f   :  { %v805_v42 = vmax.f32 %v796_v39, %v803_v41  ;;  %v1317_v39 = vld [vmem:[%s2358_s11 + $0x10] sm:$0xff]  ;;  %v1315_v41 = vld [vmem:[%s2358_s11] sm:$0xff] }
 0x361   :  { %v806_v43 = vmax.f32 %v805_v42, %v798_v40  ;;  %v1316_v40 = vld [vmem:[%s2358_s11 + $0x8] sm:$0xff]  ;;  %v1305_v42 = vld [vmem:[#allocation11] sm:$0xf]  ;;  %s1835_s11 = smov [#allocation13]  }
 0x362   :  { %v809_v44 = vpop.permute.xlu0 %808  ;;  %s1411_s0 = sshll.u32 %s1835_s11, 4  ;;  %s1412_s0 = int_to_ptr.vmem [resolvable:$true] %s1411_s0 }
 0x363   :  { %v811_v45 = vmax.f32 %v806_v43, %v809_v44  ;;  %s1791_s16 = scalar_lea.vmem %s1412_s0, 16  ;;  %s1795_s17 = scalar_lea.vmem %s1412_s0, 32 }
 0x364   :  { %p1792_p2 = scmp.ne.s32.totalorder %s1412_s0, %s1791_s16  ;;  %p1796_p3 = scmp.lt.s32.totalorder %s1412_s0, %s1412_s0 }
 0x365   :  { %1562 = vmatmul.mubr.msk.f32.vlgmr.msra.gmra.mxu1 %vm193_vm0, %v811_v45  ;;  %v813_v53 = vrot.slane %v811_v45, 7  ;;  %v815_v63 = vrot.slane %v811_v45, 1  ;;  %p1797_p4 = scmp.lt.s32.totalorder %s1795_s17, %s1791_s16 }
 0x366   :  { %1565 = vmatpush3.msra.mxu1 %v912_v46  ;;  %1580 = vmatprep.mubr.msk.f32.mxu1 %vm1832_vm6, %v1831_v0 }
 0x367   :  { %1566 = vmatprep.subr.mxu1 %v1831_v0  ;;  %v814_v56 = vsel %vm131_vm2, %v813_v53, 0.0  ;;  %v816_v2 = vsel %vm156_vm3, %v815_v63, 0.0  ;;  %v1331_v53 = vld [vmem:[%s2359_s12] sm:$0x1]  ;;  %p1798_p5 = por %p1797_p4, %p1796_p3 }
 0x368   :  { %1567 = vmatpush3.msra.mxu1 %v911_v47 }
 0x369   :  { %1568 = vmatprep.subr.mxu1 %v1831_v0  ;;  %p1799_p6 = pnand %p1798_p5, %p1792_p2 }
 0x36a   :  { %1569 = vmatpush3.msra.mxu1 %v910_v48 }
 0x36b   :  { %1570 = vmatprep.subr.mxu1 %v1831_v0 }
 0x36c   :  { %1571 = vmatpush3.msra.mxu1 %v909_v49 }
 0x36d   :  { %1572 = vmatprep.subr.mxu1 %v1831_v0 }
 0x36e   :  { %1573 = vmatpush3.msra.mxu1 %v908_v50 }
 0x36f   :  { %1574 = vmatprep.subr.mxu1 %v1831_v0 }
 0x370   :  { %1575 = vmatpush3.msra.mxu1 %v907_v51 }
 0x371   :  { %1576 = vmatprep.subr.mxu1 %v1831_v0 }
 0x372   :  { %1577 = vmatpush3.msra.mxu1 %v906_v52 }
 0x373   :  { %1578 = vmatprep.subr.mxu1 %v1831_v0 }
 0x374   :  { %1579 = vmatpush3.msra.mxu1 %v905_v54 }
 0x375   :  { %1581 = vmatmul.mubr.msk.f32.vlgmr.msra.gmra.mxu1 %vm193_vm0, %v814_v56  ;;  %1583 = vmatprep.subr.mxu1 %v1831_v0 }
 0x376   :  { %1584 = vmatpush3.msra.mxu1 %v1489_v55  ;;  %1599 = vmatprep.mubr.msk.f32.mxu1 %vm1832_vm6, %v1831_v0 }
 0x377   :  { %1585 = vmatprep.subr.mxu1 %v1831_v0 }
 0x378   :  { %1586 = vmatpush3.msra.mxu1 %v1488_v57 }
 0x379   :  { %1587 = vmatprep.subr.mxu1 %v1831_v0 }
 0x37a   :  { %1588 = vmatpush3.msra.mxu1 %v1487_v58 }
 0x37b   :  { %1589 = vmatprep.subr.mxu1 %v1831_v0 }
 0x37c   :  { %1590 = vmatpush3.msra.mxu1 %v1486_v59 }
 0x37d   :  { %1591 = vmatprep.subr.mxu1 %v1831_v0 }
 0x37e   :  { %1592 = vmatpush3.msra.mxu1 %v1485_v60 }
 0x37f   :  { %1593 = vmatprep.subr.mxu1 %v1831_v0 }
 0x380   :  { %1594 = vmatpush3.msra.mxu1 %v1484_v61 }
 0x381   :  { %1595 = vmatprep.subr.mxu1 %v1831_v0 }
 0x382   :  { %1596 = vmatpush3.msra.mxu1 %v1483_v62 }
 0x383   :  { %1597 = vmatprep.subr.mxu1 %v1831_v0 }
 0x384   :  { %1598 = vmatpush3.msra.mxu1 %v1482_v1 }
 0x385   :  { %1600 = vmatmul.mubr.msk.f32.vlgmr.msra.gmra.mxu1 %vm193_vm0, %v816_v2  ;;  %1602 = vmatprep.subr.mxu1 %v1831_v0 }
 0x386   :  { %1604 = vmatprep.mubr.msk.f32.mxu1 %vm1832_vm6, %v1831_v0 }
 0x425   :  { %v901_v3 = vpop.f32.mrf.mxu1 }
 0x426   :  { %v902_v8 = vadd.f32 %v1479_v7, %v901_v3 }
 0x427   :  { %v1563_v4 = vpop.f32.mrf.mxu1 }
 0x435   :  { %v982_v5 = vpop.f32.mrf.mxu1 }
 0x436   :  { %v986_v9 = vadd.f32 %v982_v5, %v902_v8 }
 0x437   :  { %v1582_v6 = vpop.f32.mrf.mxu1 }
 0x445   :  { %v1065_v10 = vpop.f32.mrf.mxu1 }
 0x446   :  { %v1069_v11 = vadd.f32 %v1065_v10, %v986_v9 }
 0x447   :  { %v1601_v12 = vpop.f32.mrf.mxu1 }
 0x448   :  { %v1070_v13 = vmax.f32 %v1069_v11, 0.0 }
 0x44a   :  { %1603 = vmatpush3.msra.mxu1 %v1070_v13 }
 0x44b   :  { %1605 = vmatmul.mubr.msk.f32.vlgmr.msra.gmra.mxu1 %vm1072_vm7, %v1071_v28  ;;  %1607 = vmatprep.subr.mxu1 %v1831_v0 }
 0x44c   :  { %1611 = vmatprep.mubr.msk.f32.mxu1 %vm1832_vm6, %v1831_v0  ;;  %1608 = vmatpush3.msra.mxu1 %v1151_v14 }
 0x44d   :  { %1609 = vmatprep.subr.mxu1 %v1831_v0 }
 0x44e   :  { %1610 = vmatpush3.msra.mxu1 %v1150_v15 }
 0x44f   :  { %1614 = vmatprep.subr.mxu1 %v1831_v0 }
 0x50b   :  { %v1142_v16 = vpop.f32.mrf.mxu1 }
 0x50c   :  { %v1147_v17 = vrot.slane %v1142_v16, 4 }
 0x50d   :  { %v1606_v18 = vpop.f32.mrf.mxu1 }
 0x50e   :  { %v1149_v19 = vmax.f32 %v1142_v16, %v1147_v17 }
 0x510   :  { %1612 = vmatmul.mubr.msk.f32.vlgmr.msra.gmra.mxu1 %vm1152_vm8, %v1149_v19 }
 0x511   :  { %1616 = vmatprep.mubr.msk.f32.mxu1 %vm1832_vm6, %v1831_v0  ;;  %1615 = vmatpush3.msra.mxu1 %v1231_v20 }
 0x512   :  { %1619 = vmatprep.subr.mxu1 %v1831_v0 }
 0x5d0   :  { %v1222_v21 = vpop.f32.mrf.mxu1 }
 0x5d1   :  { %1227 = vrot.lane.b32.xlu1 %v1222_v21, %s1834_s8 }
 0x5d2   :  { %v1613_v22 = vpop.f32.mrf.mxu1 }
 0x643   :  { %v1228_v23 = vpop.permute.xlu1 %1227 }
 0x644   :  { %v1230_v24 = vmax.f32 %v1222_v21, %v1228_v23 }
 0x646   :  { %1617 = vmatmul.mubr.msk.f32.vlgmr.msra.gmra.mxu1 %vm1072_vm7, %v1230_v24 }
 0x647   :  { %1620 = vmatpush3.msra.mxu1 %v1330_v25  ;;  %1651 = vmatprep.mubr.msk.f32.mxu1 %vm1832_vm6, %v1831_v0 }
 0x648   :  { %1621 = vmatprep.subr.mxu1 %v1831_v0 }
 0x649   :  { %1622 = vmatpush3.msra.mxu1 %v1329_v26 }
 0x64a   :  { %1623 = vmatprep.subr.mxu1 %v1831_v0 }
 0x64b   :  { %1624 = vmatpush3.msra.mxu1 %v1328_v27 }
 0x64c   :  { %1625 = vmatprep.subr.mxu1 %v1831_v0 }
 0x64d   :  { %1626 = vmatpush3.msra.mxu1 %v1327_v29 }
 0x64e   :  { %1627 = vmatprep.subr.mxu1 %v1831_v0 }
 0x64f   :  { %1628 = vmatpush3.msra.mxu1 %v1326_v30 }
 0x650   :  { %1629 = vmatprep.subr.mxu1 %v1831_v0 }
 0x651   :  { %1630 = vmatpush3.msra.mxu1 %v1325_v31 }
 0x652   :  { %1631 = vmatprep.subr.mxu1 %v1831_v0 }
 0x653   :  { %1632 = vmatpush3.msra.mxu1 %v1324_v32 }
 0x654   :  { %1633 = vmatprep.subr.mxu1 %v1831_v0 }
 0x655   :  { %1634 = vmatpush3.msra.mxu1 %v1323_v33 }
 0x656   :  { %1635 = vmatprep.subr.mxu1 %v1831_v0 }
 0x657   :  { %1636 = vmatpush3.msra.mxu1 %v1322_v34 }
 0x658   :  { %1637 = vmatprep.subr.mxu1 %v1831_v0 }
 0x659   :  { %1638 = vmatpush3.msra.mxu1 %v1321_v35 }
 0x65a   :  { %1639 = vmatprep.subr.mxu1 %v1831_v0 }
 0x65b   :  { %1640 = vmatpush3.msra.mxu1 %v1320_v36 }
 0x65c   :  { %1641 = vmatprep.subr.mxu1 %v1831_v0 }
 0x65d   :  { %1642 = vmatpush3.msra.mxu1 %v1319_v37 }
 0x65e   :  { %1643 = vmatprep.subr.mxu1 %v1831_v0 }
 0x65f   :  { %1644 = vmatpush3.msra.mxu1 %v1318_v38 }
 0x660   :  { %1645 = vmatprep.subr.mxu1 %v1831_v0 }
 0x661   :  { %1646 = vmatpush3.msra.mxu1 %v1317_v39 }
 0x662   :  { %1647 = vmatprep.subr.mxu1 %v1831_v0 }
 0x663   :  { %1648 = vmatpush3.msra.mxu1 %v1316_v40 }
 0x664   :  { %1649 = vmatprep.subr.mxu1 %v1831_v0 }
 0x665   :  { %1650 = vmatpush3.msra.mxu1 %v1315_v41 }
 0x706   :  { %v1301_v43 = vpop.f32.mrf.mxu1 }
 0x707   :  { %v1306_v44 = vmul.f32 %v1305_v42, %v1301_v43 }
 0x708   :  { %v1618_v45 = vpop.f32.mrf.mxu1 }
 0x709   :  { %v1308_v46 = vsel %vm1307_vm9, %v1306_v44, 0.0 }
 0x70a   :  { %v1309_v47 = vrot.slane %v1308_v46, 4 }
 0x70c   :  { %v1310_v48 = vadd.f32 %v1309_v47, %v1308_v46 }
 0x70e   :  { %v1311_v49 = vrot.slane %v1310_v48, 2 }
 0x710   :  { %v1312_v50 = vadd.f32 %v1311_v49, %v1310_v48 }
 0x712   :  { %v1313_v51 = vrot.slane %v1312_v50, 1 }
 0x714   :  { %v1314_v52 = vadd.f32 %v1313_v51, %v1312_v50 }
 0x716   :  { %1652 = vmatmul.mubr.f32.vlgmr.msra.gmra.mxu1 %v1314_v52 }
 0x7d6   :  { %v1398_v54 = vpop.f32.mrf.mxu1 }
 0x7d7   :  { %v1399_v0 = vadd.f32 %v1398_v54, %v1331_v53 }
 0x7d8   :  { %v1653_v55 = vpop.f32.mrf.mxu1 }
 0x7d9   :  { %1669 = vtanh.f32 %v1399_v0 }
 0x7e6   :  { %v1670_v56 = vpop.eup %1669 }
 0x7e7   :  { %1404 = vst.msk [vmem:[#allocation13] sm:$0x1] %vm1403_vm10, %v1670_v56 }
 0x7e8   :  { %1802 = shalt.err (!%p1799_p6)
}
 0x7e9   :  { %1414 = dma.vmem_to_hbm [thread:$0]  %s1412_s0, 16, %s2360_s13, [#allocation4]  }
 0x7ea   :  { %1819 = dma.done.wait [#allocation4], 16  }
 0x7eb   :  { %1820 = vsyncadd [#allocation4], 4294967280 }
 0x7ec   :  { %1418 = vsyncpa [#allocation3], 1 }
 0x7ed   :  { %1419 = vsyncpa [#allocation6], 1 }
 0x7ee   :  { %1420 = vsyncpa [#allocation9], 1 }
 0x7ef   :  { %1421 = vsyncpa [#allocation12], 1 }
 0x7f0   :  { %1422 = vsyncpa [#allocation4], 1 }

</bundles_post_ra>
